<compile_context>
chip_gen: v7x
topology: tpu7x:2x2x1
jax: 0.10.0
libtpu: 0.0.40
codegen_flags: <defaults>
</compile_context>

<pallas_src>
import functools

import jax
import jax.numpy as jnp
from jax.experimental import pallas as pl
from jax.experimental.pallas import tpu as pltpu


LANE = 128
AGG_TILE_CAP = 2048          # 8 MiB bf16 A tile; 2x buffered fits every gen
ROW_TILE_CAP = 512           # row tiles for the small (X@W / proj) matmuls
XW_RESIDENT_BYTES = 8 * 1024 * 1024  # keep whole XW' in VMEM when <= this


def _vmem_limit_bytes():
    # Generation-aware scoped-VMEM limit (v5e/v6e: 128 MiB phys, v7x: 64 MiB).
    try:
        cap = int(pltpu.get_tpu_info().vmem_capacity_bytes)
    except Exception:
        cap = 64 * 1024 * 1024  # assume the smallest (v7x) if query fails
    return int(max(min(cap - 16 * 1024 * 1024, 96 * 1024 * 1024),
                   32 * 1024 * 1024))


VMEM_LIMIT = _vmem_limit_bytes()


# ---------------------------------------------------------------------------
# small helpers
# ---------------------------------------------------------------------------
def _pad_to(n, m):
    return ((n + m - 1) // m) * m


def _pad2(x, rows, cols):
    r, c = x.shape
    return jnp.pad(x, ((0, rows - r), (0, cols - c)))


def _largest_tile(n_pad, cap):
    # largest multiple of LANE that divides n_pad and is <= cap
    t = min(cap, n_pad)
    t -= t % LANE
    t = max(t, LANE)
    while n_pad % t:
        t -= LANE
    return t


def _apply_act(y, act):
    if act == "relu":
        return jnp.maximum(y, 0.0)
    if act == "elu":
        # F.elu(x) = x if x > 0 else exp(x) - 1
        return jnp.where(y > 0.0, y, jnp.expm1(y))
    if act == "none":
        return y
    raise ValueError(f"unsupported activation: {act}")


# ---------------------------------------------------------------------------
# Pallas kernels
# ---------------------------------------------------------------------------
def xw_kernel(x_ref, w_ref, d_ref, o_ref):
    # Row tile of d * (X @ W): feature transform + right D^-1/2 scaling.
    xw = jnp.dot(x_ref[...], w_ref[...], preferred_element_type=jnp.float32)
    o_ref[...] = (d_ref[...] * xw).astype(o_ref.dtype)


def agg_kernel(a_ref, xw_ref, d_ref, b_ref, o_ref, acc_ref, *,
               act, tk, xw_resident):
    # Tiled (A) @ XW' reduction over the k (column-tile) axis.
    k = pl.program_id(1)

    @pl.when(k == 0)
    def _init():
        acc_ref[...] = jnp.zeros_like(acc_ref)

    if xw_resident:
        off = pl.multiple_of(k * tk, tk)
        xw = xw_ref[pl.ds(off, tk), :]
    else:
        xw = xw_ref[...]
    acc_ref[...] += jnp.dot(a_ref[...], xw, preferred_element_type=jnp.float32)

    @pl.when(k == pl.num_programs(1) - 1)
    def _finalize():
        # left D^-1/2 row scaling + bias + activation, all in f32
        y = d_ref[...] * acc_ref[...] + b_ref[...]
        o_ref[...] = _apply_act(y, act).astype(o_ref.dtype)


def agg_proj_kernel(a_ref, xw_ref, d_ref, b_ref,
                    w1_ref, b1_ref, w2_ref, b2_ref,
                    emb_ref, z_ref, acc_ref, *,
                    gnn_act, proj_act, tk, xw_resident):
    # Last GCN layer aggregation with the projection head fused into finalize.
    k = pl.program_id(1)

    @pl.when(k == 0)
    def _init():
        acc_ref[...] = jnp.zeros_like(acc_ref)

    if xw_resident:
        off = pl.multiple_of(k * tk, tk)
        xw = xw_ref[pl.ds(off, tk), :]
    else:
        xw = xw_ref[...]
    acc_ref[...] += jnp.dot(a_ref[...], xw, preferred_element_type=jnp.float32)

    @pl.when(k == pl.num_programs(1) - 1)
    def _finalize():
        emb = _apply_act(d_ref[...] * acc_ref[...] + b_ref[...], gnn_act)
        emb_ref[...] = emb.astype(emb_ref.dtype)
        h = jnp.dot(emb.astype(w1_ref.dtype), w1_ref[...],
                    preferred_element_type=jnp.float32)
        h = _apply_act(h + b1_ref[...], proj_act)
        z = jnp.dot(h.astype(w2_ref.dtype), w2_ref[...],
                    preferred_element_type=jnp.float32)
        z_ref[...] = (z + b2_ref[...]).astype(z_ref.dtype)


# ---------------------------------------------------------------------------
# pallas_call wrappers
# ---------------------------------------------------------------------------
def matmul_rows(x, w, d, *, tm, out_dtype):
    n, f_in = x.shape
    f_out = w.shape[1]
    return pl.pallas_call(
        xw_kernel,
        out_shape=jax.ShapeDtypeStruct((n, f_out), out_dtype),
        grid_spec=pltpu.PrefetchScalarGridSpec(
            num_scalar_prefetch=0,
            grid=(n // tm,),
            in_specs=[
                pl.BlockSpec((tm, f_in), lambda i: (i, 0)),
                pl.BlockSpec((f_in, f_out), lambda i: (0, 0)),
                pl.BlockSpec((tm, 1), lambda i: (i, 0)),
            ],
            out_specs=pl.BlockSpec((tm, f_out), lambda i: (i, 0)),
        ),
        compiler_params=pltpu.CompilerParams(
            dimension_semantics=("parallel",),
            vmem_limit_bytes=VMEM_LIMIT,
        ),
        cost_estimate=pl.CostEstimate(
            flops=int(2 * n * f_in * f_out),
            transcendentals=0,
            bytes_accessed=int(x.size * x.dtype.itemsize
                               + w.size * w.dtype.itemsize
                               + n * 4
                               + n * f_out * jnp.dtype(out_dtype).itemsize),
        ),
    )(x, w, d)


def _xw_spec(n, f_out, tk, xw_resident):
    if xw_resident:
        return pl.BlockSpec((n, f_out), lambda i, k: (0, 0))
    return pl.BlockSpec((tk, f_out), lambda i, k: (k, 0))


def gcn_aggregate(a, xw, d, b, act, *, tm, tk, out_dtype):
    n = a.shape[0]
    f_out = xw.shape[1]
    grid = (n // tm, n // tk)
    xw_resident = xw.size * xw.dtype.itemsize <= XW_RESIDENT_BYTES
    kernel = functools.partial(agg_kernel, act=act, tk=tk,
                               xw_resident=xw_resident)
    xw_passes = 1 if xw_resident else grid[0]
    bytes_accessed = int(
        a.size * a.dtype.itemsize
        + xw.size * xw.dtype.itemsize * xw_passes
        + n * 4 + f_out * 4
        + n * f_out * jnp.dtype(out_dtype).itemsize
    )
    return pl.pallas_call(
        kernel,
        out_shape=jax.ShapeDtypeStruct((n, f_out), out_dtype),
        grid_spec=pltpu.PrefetchScalarGridSpec(
            num_scalar_prefetch=0,
            grid=grid,
            in_specs=[
                pl.BlockSpec((tm, tk), lambda i, k: (i, k)),
                _xw_spec(n, f_out, tk, xw_resident),
                pl.BlockSpec((tm, 1), lambda i, k: (i, 0)),
                pl.BlockSpec((1, f_out), lambda i, k: (0, 0)),
            ],
            out_specs=pl.BlockSpec((tm, f_out), lambda i, k: (i, 0)),
            scratch_shapes=[pltpu.VMEM((tm, f_out), jnp.float32)],
        ),
        compiler_params=pltpu.CompilerParams(
            dimension_semantics=("parallel", "arbitrary"),
            vmem_limit_bytes=VMEM_LIMIT,
        ),
        cost_estimate=pl.CostEstimate(
            flops=int(2 * n * n * f_out),
            transcendentals=0,
            bytes_accessed=bytes_accessed,
        ),
    )(a, xw, d, b)


def gcn_aggregate_project(a, xw, d, b, w1, b1, w2, b2,
                          gnn_act, proj_act, *, tm, tk):
    n = a.shape[0]
    f_out = xw.shape[1]
    d_hid = w1.shape[1]
    d_out = w2.shape[1]
    grid = (n // tm, n // tk)
    xw_resident = xw.size * xw.dtype.itemsize <= XW_RESIDENT_BYTES
    kernel = functools.partial(agg_proj_kernel, gnn_act=gnn_act,
                               proj_act=proj_act, tk=tk,
                               xw_resident=xw_resident)
    xw_passes = 1 if xw_resident else grid[0]
    bytes_accessed = int(
        a.size * a.dtype.itemsize
        + xw.size * xw.dtype.itemsize * xw_passes
        + n * 4
        + (f_out + d_hid + d_out) * 4
        + (f_out * d_hid + d_hid * d_out) * 2
        + n * f_out * 4 + n * d_out * 4
    )
    flops = int(2 * n * n * f_out
                + 2 * n * (f_out * d_hid + d_hid * d_out))
    return pl.pallas_call(
        kernel,
        out_shape=(jax.ShapeDtypeStruct((n, f_out), jnp.float32),
                   jax.ShapeDtypeStruct((n, d_out), jnp.float32)),
        grid_spec=pltpu.PrefetchScalarGridSpec(
            num_scalar_prefetch=0,
            grid=grid,
            in_specs=[
                pl.BlockSpec((tm, tk), lambda i, k: (i, k)),
                _xw_spec(n, f_out, tk, xw_resident),
                pl.BlockSpec((tm, 1), lambda i, k: (i, 0)),
                pl.BlockSpec((1, f_out), lambda i, k: (0, 0)),
                pl.BlockSpec((f_out, d_hid), lambda i, k: (0, 0)),
                pl.BlockSpec((1, d_hid), lambda i, k: (0, 0)),
                pl.BlockSpec((d_hid, d_out), lambda i, k: (0, 0)),
                pl.BlockSpec((1, d_out), lambda i, k: (0, 0)),
            ],
            out_specs=[
                pl.BlockSpec((tm, f_out), lambda i, k: (i, 0)),
                pl.BlockSpec((tm, d_out), lambda i, k: (i, 0)),
            ],
            scratch_shapes=[pltpu.VMEM((tm, f_out), jnp.float32)],
        ),
        compiler_params=pltpu.CompilerParams(
            dimension_semantics=("parallel", "arbitrary"),
            vmem_limit_bytes=VMEM_LIMIT,
        ),
        cost_estimate=pl.CostEstimate(
            flops=flops,
            transcendentals=int(n * d_hid),   # elu in the proj head
            bytes_accessed=bytes_accessed,
        ),
    )(a, xw, d, b, w1, b1, w2, b2)


# ---------------------------------------------------------------------------
# Graph glue (plain JAX): binary (A + I) in bf16 + D^-1/2 vector in f32.
# Duplicate edges are deduped (set, not add) and the diagonal is set to 1
# exactly once (no double-counted self loops).
# ---------------------------------------------------------------------------
def build_adjacency(edge_index, num_nodes, n_pad):
    src = edge_index[0]
    dst = edge_index[1]
    a = jnp.zeros((n_pad, n_pad), dtype=jnp.bfloat16)
    # message flows src -> dst, aggregated at dst:  A[dst, src] = 1
    a = a.at[dst, src].set(1.0)
    diag = jnp.arange(num_nodes)
    a = a.at[diag, diag].set(1.0)                     # self loops (values 0/1)
    deg = jnp.sum(a, axis=1, dtype=jnp.float32)       # pad rows have deg 0
    d_inv_sqrt = jnp.where(deg > 0.0,
                           jax.lax.rsqrt(jnp.maximum(deg, 1e-12)),
                           0.0)
    return a, d_inv_sqrt.reshape(n_pad, 1)


# ---------------------------------------------------------------------------
# GRACE model (parameters + forward)
# ---------------------------------------------------------------------------
def init_grace_params(key, num_feats, gnn_hid_dim, gnn_out_dim,
                      num_proj_hidden, n_gnn_layers):
    params = {"gcn": []}
    in_dim = num_feats
    hid = gnn_hid_dim
    for i in range(n_gnn_layers):
        out_dim = gnn_out_dim if i == n_gnn_layers - 1 else hid
        key, kw = jax.random.split(key)
        w = jax.random.normal(kw, (in_dim, out_dim), jnp.float32) * 0.1
        b = jnp.zeros((out_dim,), jnp.float32)
        params["gcn"].append((w, b))
        in_dim = out_dim
    key, k1, k2 = jax.random.split(key, 3)
    params["fc1_w"] = jax.random.normal(k1, (gnn_out_dim, num_proj_hidden),
                                        jnp.float32) * 0.1
    params["fc1_b"] = jnp.zeros((num_proj_hidden,), jnp.float32)
    params["fc2_w"] = jax.random.normal(k2, (num_proj_hidden, gnn_out_dim),
                                        jnp.float32) * 0.1
    params["fc2_b"] = jnp.zeros((gnn_out_dim,), jnp.float32)
    return params


def grace_forward(params, x, edge_index, gnn_act="relu", proj_act="elu"):
    n, f_in = x.shape
    n_pad = _pad_to(n, LANE)

    # Binary A (+ self loops) in bf16, D^-1/2 kept separate in f32.
    a_bin, d_col = build_adjacency(edge_index, n, n_pad)

    tm = tk = _largest_tile(n_pad, AGG_TILE_CAP)      # aggregation tiles
    tm_x = _largest_tile(n_pad, ROW_TILE_CAP)         # XW / proj row tiles

    # Padded bf16 features. Invariant: padded rows/cols never influence real
    # rows because A's padded columns are zero and d_inv_sqrt is zero on
    # padded rows; outputs are sliced to [:n] at the end.
    h = _pad2(x, n_pad, _pad_to(f_in, LANE)).astype(jnp.bfloat16)

    n_layers = len(params["gcn"])
    gnn_out_dim = params["gcn"][-1][0].shape[1]
    proj_out_dim = params["fc2_w"].shape[1]

    emb_pad = None
    z_pad = None
    for li, (w, b) in enumerate(params["gcn"]):
        f_i, f_o = w.shape
        f_i_pad = _pad_to(f_i, LANE)
        f_o_pad = _pad_to(f_o, LANE)
        w_p = _pad2(w, f_i_pad, f_o_pad).astype(jnp.bfloat16)
        b_p = jnp.pad(b, (0, f_o_pad - f_o)).astype(jnp.float32).reshape(1, -1)

        # (1) XW' = D^-1/2 (X @ W), once per layer, VMEM-resident downstream.
        xw = matmul_rows(h, w_p, d_col, tm=tm_x, out_dtype=jnp.bfloat16)

        if li != n_layers - 1:
            # (2) tiled aggregation + fused left-scale/bias/activation
            h = gcn_aggregate(a_bin, xw, d_col, b_p, gnn_act,
                              tm=tm, tk=tk, out_dtype=jnp.bfloat16)
        else:
            # Last layer: fuse the projection head into the finalize.
            w1, b1 = params["fc1_w"], params["fc1_b"]
            w2, b2 = params["fc2_w"], params["fc2_b"]
            d_in_p = _pad_to(w1.shape[0], LANE)
            d_hid_p = _pad_to(w1.shape[1], LANE)
            d_out_p = _pad_to(w2.shape[1], LANE)
            w1_p = _pad2(w1, d_in_p, d_hid_p).astype(jnp.bfloat16)
            b1_p = jnp.pad(b1, (0, d_hid_p - w1.shape[1])
                           ).astype(jnp.float32).reshape(1, -1)
            w2_p = _pad2(w2, d_hid_p, d_out_p).astype(jnp.bfloat16)
            b2_p = jnp.pad(b2, (0, d_out_p - w2.shape[1])
                           ).astype(jnp.float32).reshape(1, -1)
            emb_pad, z_pad = gcn_aggregate_project(
                a_bin, xw, d_col, b_p, w1_p, b1_p, w2_p, b2_p,
                gnn_act, proj_act, tm=tm, tk=tk)

    emb = emb_pad[:n, :gnn_out_dim]
    z = z_pad[:n, :proj_out_dim]
    return emb, z


# ---------------------------------------------------------------------------
# Pure-JAX f32 reference for sanity checking (same adjacency semantics)
# ---------------------------------------------------------------------------
def normalized_adjacency_ref(edge_index, num_nodes):
    a = jnp.zeros((num_nodes, num_nodes), jnp.float32)
    a = a.at[edge_index[1], edge_index[0]].set(1.0)
    diag = jnp.arange(num_nodes)
    a = a.at[diag, diag].set(1.0)
    deg = jnp.sum(a, axis=1)
    d = jnp.where(deg > 0.0, 1.0 / jnp.sqrt(deg), 0.0)
    return a * d[:, None] * d[None, :]


def grace_forward_ref(params, x, edge_index, gnn_act="relu", proj_act="elu"):
    a_hat = normalized_adjacency_ref(edge_index, x.shape[0])
    h = x
    for (w, b) in params["gcn"]:
        h = _apply_act(a_hat @ (h @ w) + b, gnn_act)
    emb = h
    y = _apply_act(emb @ params["fc1_w"] + params["fc1_b"], proj_act)
    z = y @ params["fc2_w"] + params["fc2_b"]
    return emb, z


if __name__ == "__main__":
    key = jax.random.PRNGKey(0)

    # Small synthetic config (matches GRACE __init__ semantics)
    N = 16            # number of nodes
    NUM_FEATS = 16
    GNN_HID = 32
    GNN_OUT = 32
    PROJ_HID = 32
    N_LAYERS = 2
    E = 40            # number of edges

    key, kx, ke, kp = jax.random.split(key, 4)
    x = jax.random.normal(kx, (N, NUM_FEATS), jnp.float32)
    edge_index = jax.random.randint(ke, (2, E), 0, N, dtype=jnp.int32)

    params = init_grace_params(kp, NUM_FEATS, GNN_HID, GNN_OUT,
                               PROJ_HID, N_LAYERS)

    emb, z = grace_forward(params, x, edge_index,
                           gnn_act="relu", proj_act="elu")
    emb = jax.block_until_ready(emb)
    z = jax.block_until_ready(z)

    emb_ref, z_ref = grace_forward_ref(params, x, edge_index,
                                       gnn_act="relu", proj_act="elu")
    assert emb.shape == (N, GNN_OUT) and z.shape == (N, GNN_OUT)
    # bf16 MXU inputs with f32 accumulation -> relaxed tolerance
    assert jnp.allclose(emb, emb_ref, atol=5e-2, rtol=5e-2), (
        float(jnp.max(jnp.abs(emb - emb_ref))))
    assert jnp.allclose(z, z_ref, atol=5e-2, rtol=5e-2), (
        float(jnp.max(jnp.abs(z - z_ref))))

    print("KERNEL_OK")
</pallas_src>

<mosaic_0001>
module attributes {stable_mosaic.version = 11 : i64} {
  func.func @xw_kernel(%arg0: i32, %arg1: memref<128x128xbf16, #tpu.memory_space<vmem>>, %arg2: memref<128x128xbf16, #tpu.memory_space<vmem>>, %arg3: memref<128x1xf32, #tpu.memory_space<vmem>>, %arg4: memref<128x128xbf16, #tpu.memory_space<vmem>>) attributes {dimension_semantics = [#tpu.dimension_semantics<parallel>], iteration_bounds = array<i64: 1>, scalar_prefetch = 0 : i64, scratch_operands = 0 : i64, tpu.core_type = #tpu.core_type<tc>, window_params = [{transform_indices = @transform_0, window_bounds = array<i64: 128, 128>}, {pipeline_mode = #tpu.pipeline_mode<synchronous>, transform_indices = @transform_1, window_bounds = array<i64: 128, 128>}, {transform_indices = @transform_2, window_bounds = array<i64: 128, 1>}, {transform_indices = @transform_3, window_bounds = array<i64: 128, 128>}]} {
    %c0 = arith.constant 0 : index
    %c0_0 = arith.constant 0 : index
    %0 = vector.load %arg1[%c0, %c0_0] : memref<128x128xbf16, #tpu.memory_space<vmem>>, vector<128x128xbf16>
    %c0_1 = arith.constant 0 : index
    %c0_2 = arith.constant 0 : index
    %1 = vector.load %arg2[%c0_1, %c0_2] : memref<128x128xbf16, #tpu.memory_space<vmem>>, vector<128x128xbf16>
    %cst = arith.constant dense<0.000000e+00> : vector<128x128xf32>
    %2 = tpu.matmul %0, %1, %cst {dimension_numbers = #tpu.dot_dimension_numbers<[1], [0], [0], [1], [0, 0, 1, 1], [], []>} : vector<128x128xbf16>, vector<128x128xbf16>, vector<128x128xf32> -> vector<128x128xf32>
    %c0_3 = arith.constant 0 : index
    %c0_4 = arith.constant 0 : index
    %3 = vector.load %arg3[%c0_3, %c0_4] : memref<128x1xf32, #tpu.memory_space<vmem>>, vector<128x1xf32>
    %4 = vector.broadcast %3 : vector<128x1xf32> to vector<128x128xf32>
    %5 = arith.mulf %4, %2 : vector<128x128xf32>
    %6 = arith.truncf %5 : vector<128x128xf32> to vector<128x128xbf16>
    %c0_5 = arith.constant 0 : index
    %c0_6 = arith.constant 0 : index
    %7 = vector.load %arg4[%c0_5, %c0_6] : memref<128x128xbf16, #tpu.memory_space<vmem>>, vector<128x128xbf16>
    tpu.vector_store %arg4[%c0_5, %c0_6], %6 {strides = array<i32>} : memref<128x128xbf16, #tpu.memory_space<vmem>>, vector<128x128xbf16>,
    return
  }
  func.func @transform_0(%arg0: i32) -> (i32, i32) {
    %c0_i32 = arith.constant 0 : i32
    %c0_i32_0 = arith.constant 0 : i32
    return %arg0, %c0_i32 : i32, i32
  }
  func.func @transform_1(%arg0: i32) -> (i32, i32) {
    %c0_i32 = arith.constant 0 : i32
    %c0_i32_0 = arith.constant 0 : i32
    %c0_i32_1 = arith.constant 0 : i32
    return %c0_i32, %c0_i32_0 : i32, i32
  }
  func.func @transform_2(%arg0: i32) -> (i32, i32) {
    %c0_i32 = arith.constant 0 : i32
    %c0_i32_0 = arith.constant 0 : i32
    return %arg0, %c0_i32 : i32, i32
  }
  func.func @transform_3(%arg0: i32) -> (i32, i32) {
    %c0_i32 = arith.constant 0 : i32
    %c0_i32_0 = arith.constant 0 : i32
    return %arg0, %c0_i32 : i32, i32
  }
}

</mosaic_0001>

<bundles_post_ra>
// kernel: tpu_custom_call.1
= control target key start
LH: loop header
LB: loop body
LE: loop exit
PB: predicated region body
PF: predicated region fallthrough
CT: control target
= control target key end

     0   :  { %v654_v2 = vmov 0   ;;  %s786_s0 = inlined_call_operand.vmem [shape: bf16[128,128], index: 0, kind: input, shape index: {}]   ;;  %s787_s1 = inlined_call_operand.vmem [shape: bf16[128,128], index: 1, kind: input, shape index: {}]   ;;  %s788_s2 = inlined_call_operand.vmem [shape: f32[128,1], index: 2, kind: input, shape index: {}]   ;;  %s789_s3 = inlined_call_operand.hbm [shape: bf16[128,128], index: 3, kind: output, shape index: {}]  }
   0x1   :  { %v614_v0 = vld [vmem:[%s787_s1] sm:$0xff]   ;;  %v615_v1 = vld [vmem:[%s787_s1 + $0x8] sm:$0xff]   ;;  %613 = vset.pattern.permute.xlu1 %v654_v2  ;;  %612 = vset.pattern.permute.xlu0 %v654_v2  ;;  %v616_v3 = vld [vmem:[%s787_s1 + $0x10] sm:$0xff]  }
   0x2   :  { %560 = vmatprep.subr.bf16.mxu0 %v614_v0  ;;  %592 = vmatprep.subr.bf16.mxu1 %v614_v0  ;;  %v617_v4 = vld [vmem:[%s787_s1 + $0x18] sm:$0xff]   ;;  %v622_v5 = vld [vmem:[%s786_s0] sm:$0xff]   ;;  %v619_v8 = vld [vmem:[%s787_s1 + $0x28] sm:$0xff]  }
   0x3   :  { %561 = vmatpush3.bf16.msra.mxu0 %v614_v0  ;;  %600 = vmatpush3.bf16.msra.mxu1 %v614_v0  ;;  %v623_v6 = vld [vmem:[%s786_s0 + $0x20] sm:$0xff]   ;;  %v243_v9 = vld [vmem:[%s788_s2 + $0x10] sm:$0xff]  ;;  %v244_v11 = vld [vmem:[%s788_s2 + $0x18] sm:$0xff] }
   0x4   :  { %562 = vmatprep.subr.bf16.mxu0 %v615_v1  ;;  %593 = vmatprep.subr.bf16.mxu1 %v615_v1  ;;  %v618_v7 = vld [vmem:[%s787_s1 + $0x20] sm:$0xff]   ;;  %v242_v12 = vld [vmem:[%s788_s2 + $0x8] sm:$0xff]  ;;  %v620_v13 = vld [vmem:[%s787_s1 + $0x30] sm:$0xff]  }
   0x5   :  { %576 = vmatprep.mubr.bf16.mxu0 %v622_v5  ;;  %584 = vmatprep.mubr.bf16.mxu1 %v623_v6  ;;  %v241_v10 = vld [vmem:[%s788_s2] sm:$0xff] }
   0x6   :  { %269 = vperm.xlu1 %613, %v243_v9   ;;  %259 = vperm.xlu0 %612, %v241_v10  }
   0x7   :  { %563 = vmatpush3.bf16.msra.mxu0 %v615_v1  ;;  %601 = vmatpush3.bf16.msra.mxu1 %v615_v1 }
   0x8   :  { %564 = vmatprep.subr.bf16.mxu0 %v616_v3  ;;  %594 = vmatprep.subr.bf16.mxu1 %v616_v3 }
   0xa   :  { %274 = vperm.xlu1 %613, %v244_v11   ;;  %264 = vperm.xlu0 %612, %v242_v12  }
   0xb   :  { %565 = vmatpush3.bf16.msra.mxu0 %v616_v3  ;;  %602 = vmatpush3.bf16.msra.mxu1 %v616_v3 }
   0xc   :  { %566 = vmatprep.subr.bf16.mxu0 %v617_v4  ;;  %595 = vmatprep.subr.bf16.mxu1 %v617_v4 }
   0xf   :  { %567 = vmatpush3.bf16.msra.mxu0 %v617_v4  ;;  %603 = vmatpush3.bf16.msra.mxu1 %v617_v4 }
  0x10   :  { %568 = vmatprep.subr.bf16.mxu0 %v618_v7  ;;  %596 = vmatprep.subr.bf16.mxu1 %v618_v7 }
  0x13   :  { %569 = vmatpush3.bf16.msra.mxu0 %v618_v7  ;;  %604 = vmatpush3.bf16.msra.mxu1 %v618_v7 }
  0x14   :  { %570 = vmatprep.subr.bf16.mxu0 %v619_v8  ;;  %597 = vmatprep.subr.bf16.mxu1 %v619_v8 }
  0x15   :  { %8 = vsyncpa [#allocation3], 0  ;;  %v246_v14 = vld [vmem:[%s788_s2 + $0x28] sm:$0xff]  ;;  %v245_v15 = vld [vmem:[%s788_s2 + $0x20] sm:$0xff] }
  0x16   :  { %v621_v16 = vld [vmem:[%s787_s1 + $0x38] sm:$0xff]   ;;  %284 = vperm.xlu1 %613, %v246_v14   ;;  %279 = vperm.xlu0 %612, %v245_v15   ;;  %v247_v18 = vld [vmem:[%s788_s2 + $0x30] sm:$0xff]  ;;  %v624_v19 = vld [vmem:[%s786_s0 + $0x8] sm:$0xff]  }
  0x17   :  { %571 = vmatpush3.bf16.msra.mxu0 %v619_v8  ;;  %605 = vmatpush3.bf16.msra.mxu1 %v619_v8  ;;  %v248_v17 = vld [vmem:[%s788_s2 + $0x38] sm:$0xff]  ;;  %v625_v20 = vld [vmem:[%s786_s0 + $0x28] sm:$0xff]   ;;  %v249_v22 = vld [vmem:[%s788_s2 + $0x40] sm:$0xff] }
  0x18   :  { %572 = vmatprep.subr.bf16.mxu0 %v620_v13  ;;  %598 = vmatprep.subr.bf16.mxu1 %v620_v13  ;;  %v250_v21 = vld [vmem:[%s788_s2 + $0x48] sm:$0xff]  ;;  %v626_v23 = vld [vmem:[%s786_s0 + $0x10] sm:$0xff]   ;;  %v252_v25 = vld [vmem:[%s788_s2 + $0x58] sm:$0xff] }
  0x19   :  { %v627_v24 = vld [vmem:[%s786_s0 + $0x30] sm:$0xff]   ;;  %v628_v27 = vld [vmem:[%s786_s0 + $0x18] sm:$0xff]   ;;  %v254_v29 = vld [vmem:[%s788_s2 + $0x68] sm:$0xff] }
  0x1a   :  { %294 = vperm.xlu1 %613, %v248_v17   ;;  %289 = vperm.xlu0 %612, %v247_v18   ;;  %v251_v26 = vld [vmem:[%s788_s2 + $0x50] sm:$0xff]  ;;  %v629_v28 = vld [vmem:[%s786_s0 + $0x38] sm:$0xff]   ;;  %v253_v30 = vld [vmem:[%s788_s2 + $0x60] sm:$0xff]  ;;  %s655_s0 = smov [#allocation2]  }
  0x1b   :  { %573 = vmatpush3.bf16.msra.mxu0 %v620_v13  ;;  %606 = vmatpush3.bf16.msra.mxu1 %v620_v13  ;;  %v256_v31 = vld [vmem:[%s788_s2 + $0x78] sm:$0xff]  ;;  %v255_v32 = vld [vmem:[%s788_s2 + $0x70] sm:$0xff]  ;;  %s438_s2 = sshll.u32 %s655_s0, 4  ;;  %s439_s2 = int_to_ptr.vmem [resolvable:$true] %s438_s2 }
  0x1c   :  { %574 = vmatprep.subr.bf16.mxu0 %v621_v16  ;;  %599 = vmatprep.subr.bf16.mxu1 %v621_v16  ;;  %s630_s21 = scalar_lea.vmem %s439_s2, 1024  ;;  %p635_p1 = scmp.lt.s32.totalorder %s439_s2, %s439_s2 }
  0x1d   :  { %p631_p0 = scmp.ne.s32.totalorder %s439_s2, %s630_s21  ;;  %p636_p2 = scmp.lt.s32.totalorder %s630_s21, %s630_s21 }
  0x1e   :  { %304 = vperm.xlu1 %613, %v250_v21   ;;  %299 = vperm.xlu0 %612, %v249_v22  }
  0x1f   :  { %575 = vmatpush3.bf16.msra.mxu0 %v621_v16  ;;  %607 = vmatpush3.bf16.msra.mxu1 %v621_v16  ;;  %p637_p3 = por %p636_p2, %p635_p1 }
  0x21   :  { %p638_p4 = pnand %p637_p3, %p631_p0 }
  0x22   :  { %577 = vmatmul.mubr.bf16.vlgmr.msra.gmra.mrb[0].mxu0 %v624_v19  ;;  %585 = vmatmul.mubr.bf16.vlgmr.msra.gmra.mrb[0].mxu1 %v625_v20 }
  0x23   :  { %580 = vmatprep.mubr.bf16.mxu0 %v626_v23  ;;  %588 = vmatprep.mubr.bf16.mxu1 %v627_v24 }
  0x24   :  { %314 = vperm.xlu1 %613, %v252_v25   ;;  %309 = vperm.xlu0 %612, %v251_v26  }
  0x28   :  { %324 = vperm.xlu1 %613, %v254_v29   ;;  %319 = vperm.xlu0 %612, %v253_v30  }
  0x2a   :  { %581 = vmatmul.mubr.bf16.gmra.mrb[4].mxu0 %v628_v27  ;;  %589 = vmatmul.mubr.bf16.gmra.mrb[4].mxu1 %v629_v28 }
  0x2c   :  { %334 = vperm.xlu1 %613, %v256_v31   ;;  %329 = vperm.xlu0 %612, %v255_v32  }
  0x85   :  { %v270_v33 = vpop.permute.xlu1 %269  ;;  %v260_v34 = vpop.permute.xlu0 %259 }
  0x89   :  { %v275_v35 = vpop.permute.xlu1 %274  ;;  %v265_v36 = vpop.permute.xlu0 %264 }
  0x95   :  { %v285_v37 = vpop.permute.xlu1 %284  ;;  %v280_v38 = vpop.permute.xlu0 %279 }
  0x99   :  { %v295_v39 = vpop.permute.xlu1 %294  ;;  %v290_v40 = vpop.permute.xlu0 %289 }
  0x9d   :  { %v305_v41 = vpop.permute.xlu1 %304  ;;  %v300_v42 = vpop.permute.xlu0 %299 }
  0xa3   :  { %v315_v43 = vpop.permute.xlu1 %314  ;;  %v310_v44 = vpop.permute.xlu0 %309 }
  0xa7   :  { %v325_v45 = vpop.permute.xlu1 %324  ;;  %v320_v46 = vpop.permute.xlu0 %319 }
  0xab   :  { %v335_v3 = vpop.permute.xlu1 %334  ;;  %v330_v4 = vpop.permute.xlu0 %329 }
  0xf5   :  { %v578_v47 = vpop.f32.mrb[0].mxu0  ;;  %v586_v48 = vpop.f32.mrb[0].mxu1 }
  0xf6   :  { %v178_v49 = vpop.f32.mrb[1].mxu0  ;;  %v210_v50 = vpop.f32.mrb[1].mxu1  ;;  %v339_v53 = vmul.f32 %v578_v47, %v270_v33  ;;  %v347_v54 = vmul.f32 %v586_v48, %v310_v44 }
  0xf7   :  { %v579_v51 = vpop.f32.mrb[2].mxu0  ;;  %v587_v52 = vpop.f32.mrb[2].mxu1  ;;  %v337_v59 = vmul.f32 %v260_v34, %v178_v49  ;;  %v345_v60 = vmul.f32 %v300_v42, %v210_v50 }
  0xf8   :  { %v340_v55 = vmul.f32 %v579_v51, %v275_v35  ;;  %v348_v56 = vmul.f32 %v587_v52, %v315_v43  ;;  %v181_v57 = vpop.f32.mrb[3].mxu0  ;;  %v213_v58 = vpop.f32.mrb[3].mxu1 }
  0xf9   :  { %v338_v61 = vmul.f32 %v265_v36, %v181_v57  ;;  %v346_v62 = vmul.f32 %v305_v41, %v213_v58 }
  0xfa   :  { %v505_v63 = vpack.c.bf16 %v340_v55, %v339_v53  ;;  %v525_v0 = vpack.c.bf16 %v348_v56, %v347_v54 }
  0xfb   :  { %v500_v1 = vpack.c.bf16 %v338_v61, %v337_v59  ;;  %v520_v2 = vpack.c.bf16 %v346_v62, %v345_v60 }
  0xfc   :  { %537 = vst [vmem:[#allocation2 + $0x8] sm:$0xff] %v505_v63   ;;  %541 = vst [vmem:[#allocation2 + $0x28] sm:$0xff] %v525_v0  }
  0xfd   :  { %501 = vst [vmem:[#allocation2] sm:$0xff] %v500_v1   ;;  %540 = vst [vmem:[#allocation2 + $0x20] sm:$0xff] %v520_v2   ;;  %v582_v5 = vpop.f32.mrb[4].mxu0  ;;  %v590_v6 = vpop.f32.mrb[4].mxu1 }
  0xfe   :  { %v194_v7 = vpop.f32.mrb[5].mxu0  ;;  %v226_v8 = vpop.f32.mrb[5].mxu1  ;;  %v343_v11 = vmul.f32 %v582_v5, %v290_v40  ;;  %v351_v12 = vmul.f32 %v590_v6, %v330_v4 }
  0xff   :  { %v583_v9 = vpop.f32.mrb[6].mxu0  ;;  %v591_v10 = vpop.f32.mrb[6].mxu1  ;;  %v341_v17 = vmul.f32 %v280_v38, %v194_v7  ;;  %v349_v18 = vmul.f32 %v320_v46, %v226_v8 }
 0x100   :  { %v344_v13 = vmul.f32 %v583_v9, %v295_v39  ;;  %v352_v14 = vmul.f32 %v591_v10, %v335_v3  ;;  %v197_v15 = vpop.f32.mrb[7].mxu0  ;;  %v229_v16 = vpop.f32.mrb[7].mxu1 }
 0x101   :  { %v342_v19 = vmul.f32 %v285_v37, %v197_v15  ;;  %v350_v20 = vmul.f32 %v325_v45, %v229_v16 }
 0x102   :  { %v515_v21 = vpack.c.bf16 %v344_v13, %v343_v11  ;;  %v535_v22 = vpack.c.bf16 %v352_v14, %v351_v12 }
 0x103   :  { %v510_v23 = vpack.c.bf16 %v342_v19, %v341_v17  ;;  %v530_v24 = vpack.c.bf16 %v350_v20, %v349_v18 }
 0x104   :  { %539 = vst [vmem:[#allocation2 + $0x18] sm:$0xff] %v515_v21   ;;  %543 = vst [vmem:[#allocation2 + $0x38] sm:$0xff] %v535_v22  }
 0x105   :  { %538 = vst [vmem:[#allocation2 + $0x10] sm:$0xff] %v510_v23   ;;  %542 = vst [vmem:[#allocation2 + $0x30] sm:$0xff] %v530_v24  }
 0x106   :  { %641 = shalt.err (!%p638_p4)
}
 0x107   :  { %s642_s23 = scalar_lea.hbm %s789_s3, 1024 }
 0x108   :  { %p643_p5 = scmp.ne.s32.totalorder %s789_s3, %s642_s23  ;;  %p646_p6 = scmp.lt.u32.totalorder %s642_s23, %s789_s3 }
 0x10a   :  { %p648_p7 = pnand %p646_p6, %p643_p5 }
 0x10c   :  { %651 = shalt.err (!%p648_p7)
}
 0x10d   :  { %s656_s28 = smov 64   ;;  %s657_s29 = smov 4  }
 0x10e   :  { %444 = dma.vmem_to_hbm [thread:$0]  %s439_s2, 1024, %s789_s3, [#allocation3], %s656_s28, %s656_s28, %s657_s29  }
 0x10f   :  { %652 = dma.done.wait [#allocation3], 1024  }
 0x110   :  { %653 = vsyncadd [#allocation3], 4294966272 }
 0x111   :  { %448 = vsyncpa [#allocation3], 1 }

</bundles_post_ra>
